<compile_context>
chip_gen: v7x
topology: tpu7x:2x2x1
jax: 0.10.0
libtpu: 0.0.40
codegen_flags: <defaults>
</compile_context>

<pallas_src>
import functools

import jax
import jax.numpy as jnp
from jax.experimental import pallas as pl
from jax.experimental.pallas import tpu as pltpu


def _round_up(x, m):
    return ((x + m - 1) // m) * m


def _choose_tile_rows(n, c, target_tile_bytes=4 * 1024 * 1024):
    """Largest multiple-of-8 row tile, <= 512 rows, keeping the f32 logits tile
    <= ~4 MiB so two pipeline buffers + temps fit v7x's 64 MiB VMEM comfortably."""
    tm = max(8, (target_tile_bytes // (c * 4)) // 8 * 8)
    tm = min(tm, 512)
    tm = min(tm, _round_up(n, 8))
    return tm


def _focal_loss_kernel(logits_ref, targets_ref, out_ref, acc_ref, *,
                       gamma, n_valid, tile_rows):
    pid = pl.program_id(0)

    @pl.when(pid == 0)
    def _init():
        acc_ref[...] = jnp.zeros_like(acc_ref)

    x = logits_ref[...].astype(jnp.float32)            # (TM, C)
    t = targets_ref[...]                               # (TM, 1) int32

    # Numerically stable softmax pieces -- single EUP exp pass over the tile.
    m = jnp.max(x, axis=1, keepdims=True)               # (TM, 1)
    z = x - m                                           # (TM, C)
    ez = jnp.exp(z)                                     # (TM, C)
    s = jnp.sum(ez, axis=1, keepdims=True)              # (TM, 1)

    # Gather exp(z) at the target class via a lane-iota one-hot (classes on lanes).
    class_iota = jax.lax.broadcasted_iota(jnp.int32, x.shape, 1)
    one_hot = (class_iota == t).astype(jnp.float32)
    ez_t = jnp.sum(one_hot * ez, axis=1, keepdims=True)  # (TM, 1) = exp(x_t - m)

    # pt = softmax(x)[row, target], clipped exactly like torch (.clip(min=1e-10), then log).
    # Division / log are only (TM, 1) work after the algebraic simplification
    # (pl.reciprocal(s, approx=True) would also be fine here).
    pt = jnp.maximum(ez_t / s, 1e-10)                    # (TM, 1)
    logpt = jnp.log(pt)                                  # per-row log only

    one_minus_pt = 1.0 - pt
    if gamma == 2.0:                                     # module default; static branch
        modulator = one_minus_pt * one_minus_pt
    elif gamma == 1.0:
        modulator = one_minus_pt
    elif gamma == 0.0:
        modulator = jnp.ones_like(one_minus_pt)
    else:                                                # general (non-integer) gamma
        modulator = jnp.exp(gamma * jnp.log(jnp.maximum(one_minus_pt, 1e-30)))

    loss_row = -modulator * logpt                        # (TM, 1)

    # Mask padded remainder rows (only compiled in when padding actually exists).
    if n_valid % tile_rows != 0:
        row_iota = jax.lax.broadcasted_iota(jnp.int32, loss_row.shape, 0)
        global_row = pid * tile_rows + row_iota
        loss_row = jnp.where(global_row < n_valid, loss_row, 0.0)

    acc_ref[...] += jnp.sum(loss_row, keepdims=True)     # (1, 1) accumulator

    @pl.when(pid == pl.num_programs(0) - 1)
    def _finalize():
        out_ref[...] = acc_ref[...] * (1.0 / float(n_valid))


def focal_loss(logits, targets, gamma=2.0, *, tile_rows=None):
    """logits: (N, C) float; targets: (N,) int class indices. Returns scalar f32 loss."""
    n, c = logits.shape
    if tile_rows is None:
        tm = _choose_tile_rows(n, c)
    else:
        tm = min(_round_up(max(int(tile_rows), 1), 8), _round_up(n, 8))
    n_pad = _round_up(n, tm)
    grid = n_pad // tm

    targets_2d = targets.astype(jnp.int32).reshape(n, 1)
    logits_p = logits
    if n_pad != n:
        logits_p = jnp.pad(logits, ((0, n_pad - n), (0, 0)))
        targets_2d = jnp.pad(targets_2d, ((0, n_pad - n), (0, 0)))

    kernel = functools.partial(
        _focal_loss_kernel, gamma=float(gamma), n_valid=n, tile_rows=tm
    )

    out = pl.pallas_call(
        kernel,
        out_shape=jax.ShapeDtypeStruct((1, 1), jnp.float32),
        grid_spec=pltpu.PrefetchScalarGridSpec(
            num_scalar_prefetch=0,
            grid=(grid,),
            in_specs=[
                pl.BlockSpec((tm, c), lambda i: (i, 0)),   # logits row-tile
                pl.BlockSpec((tm, 1), lambda i: (i, 0)),   # target indices row-tile
            ],
            out_specs=pl.BlockSpec((1, 1), lambda i: (0, 0)),  # resident scalar output
            scratch_shapes=[pltpu.VMEM((1, 1), jnp.float32)],  # loss-sum accumulator
        ),
        compiler_params=pltpu.CompilerParams(
            dimension_semantics=("arbitrary",),       # sequential accumulation axis
            vmem_limit_bytes=32 * 1024 * 1024,        # explicit budget (fits all gens)
        ),
    )(logits_p, targets_2d)
    return out[0, 0]


def _reference(logits, targets, gamma=2.0):
    """Pure-JAX replica of the PyTorch FocalLoss.forward (weights=None path)."""
    p = jnp.maximum(jax.nn.softmax(logits.astype(jnp.float32), axis=1), 1e-10)
    pt = jnp.take_along_axis(p, targets[:, None].astype(jnp.int32), axis=1)[:, 0]
    logpt = jnp.log(pt)
    return jnp.mean(-((1.0 - pt) ** gamma) * logpt)


if __name__ == "__main__":
    key = jax.random.PRNGKey(0)
    k1, k2, k3, k4 = jax.random.split(key, 4)

    # Case 1: single-tile path (batch=8, classes=32).
    n1, c1 = 8, 32
    logits1 = jax.random.normal(k1, (n1, c1), dtype=jnp.float32) * 2.0
    targets1 = jax.random.randint(k2, (n1,), 0, c1, dtype=jnp.int32)
    loss1 = jax.block_until_ready(focal_loss(logits1, targets1, gamma=2.0))
    ref1 = _reference(logits1, targets1, gamma=2.0)
    assert jnp.allclose(loss1, ref1, rtol=1e-5, atol=1e-6), (loss1, ref1)

    # Case 2: multi-step grid + remainder masking (batch=20, tile_rows=8 -> 3 steps).
    n2, c2 = 20, 32
    logits2 = jax.random.normal(k3, (n2, c2), dtype=jnp.float32) * 2.0
    targets2 = jax.random.randint(k4, (n2,), 0, c2, dtype=jnp.int32)
    loss2 = jax.block_until_ready(focal_loss(logits2, targets2, gamma=2.0, tile_rows=8))
    ref2 = _reference(logits2, targets2, gamma=2.0)
    assert jnp.allclose(loss2, ref2, rtol=1e-5, atol=1e-6), (loss2, ref2)

    print("KERNEL_OK")
</pallas_src>

<mosaic_0001>
module attributes {stable_mosaic.version = 11 : i64} {
  func.func @_focal_loss_kernel(%arg0: i32, %arg1: memref<8x32xf32, #tpu.memory_space<vmem>>, %arg2: memref<8x1xi32, #tpu.memory_space<vmem>>, %arg3: memref<1x1xf32, #tpu.memory_space<vmem>>, %arg4: memref<1x1xf32, #tpu.memory_space<vmem>>) attributes {dimension_semantics = [#tpu.dimension_semantics<arbitrary>], iteration_bounds = array<i64: 1>, scalar_prefetch = 0 : i64, scratch_operands = 1 : i64, tpu.core_type = #tpu.core_type<tc>, window_params = [{transform_indices = @transform_0, window_bounds = array<i64: 8, 32>}, {transform_indices = @transform_1, window_bounds = array<i64: 8, 1>}, {pipeline_mode = #tpu.pipeline_mode<synchronous>, transform_indices = @transform_2, window_bounds = array<i64: 1, 1>}]} {
    %c0_i32 = arith.constant 0 : i32
    %0 = arith.cmpi eq, %arg0, %c0_i32 : i32
    %1 = arith.extui %0 : i1 to i32
    %c0_i32_0 = arith.constant 0 : i32
    %2 = arith.cmpi ne, %1, %c0_i32_0 : i32
    scf.if %2 {
      %cst_16 = arith.constant 0.000000e+00 : f32
      %41 = vector.broadcast %cst_16 : f32 to vector<1x1xf32>
      %c0_17 = arith.constant 0 : index
      %c0_18 = arith.constant 0 : index
      %42 = vector.load %arg4[%c0_17, %c0_18] : memref<1x1xf32, #tpu.memory_space<vmem>>, vector<1x1xf32>
      tpu.vector_store %arg4[%c0_17, %c0_18], %41 {strides = array<i32>} : memref<1x1xf32, #tpu.memory_space<vmem>>, vector<1x1xf32>,
    } else {
    }
    %c0 = arith.constant 0 : index
    %c0_1 = arith.constant 0 : index
    %3 = vector.load %arg1[%c0, %c0_1] : memref<8x32xf32, #tpu.memory_space<vmem>>, vector<8x32xf32>
    %c0_2 = arith.constant 0 : index
    %c0_3 = arith.constant 0 : index
    %4 = vector.load %arg2[%c0_2, %c0_3] : memref<8x1xi32, #tpu.memory_space<vmem>>, vector<8x1xi32>
    %cst = arith.constant dense<0xFF800000> : vector<8xf32>
    %5 = vector.multi_reduction <maximumf>, %3, %cst [1] : vector<8x32xf32> to vector<8xf32>
    %6 = vector.shape_cast %5 : vector<8xf32> to vector<8x1xf32>
    %7 = vector.broadcast %6 : vector<8x1xf32> to vector<8x32xf32>
    %8 = arith.subf %3, %7 : vector<8x32xf32>
    %9 = math.exp %8 : vector<8x32xf32>
    %cst_4 = arith.constant dense<0.000000e+00> : vector<8xf32>
    %10 = vector.multi_reduction <add>, %9, %cst_4 [1] : vector<8x32xf32> to vector<8xf32>
    %11 = vector.shape_cast %10 : vector<8xf32> to vector<8x1xf32>
    %12 = tpu.iota {dimensions = array<i32: 1>} : vector<8x32xi32>
    %13 = vector.broadcast %4 : vector<8x1xi32> to vector<8x32xi32>
    %14 = arith.cmpi eq, %12, %13 : vector<8x32xi32>
    %15 = arith.extui %14 : vector<8x32xi1> to vector<8x32xi32>
    %16 = arith.sitofp %15 : vector<8x32xi32> to vector<8x32xf32>
    %17 = arith.mulf %16, %9 : vector<8x32xf32>
    %cst_5 = arith.constant dense<0.000000e+00> : vector<8xf32>
    %18 = vector.multi_reduction <add>, %17, %cst_5 [1] : vector<8x32xf32> to vector<8xf32>
    %19 = vector.shape_cast %18 : vector<8xf32> to vector<8x1xf32>
    %20 = arith.divf %19, %11 : vector<8x1xf32>
    %cst_6 = arith.constant 1.000000e-10 : f32
    %21 = vector.broadcast %cst_6 : f32 to vector<8x1xf32>
    %22 = arith.maximumf %20, %21 : vector<8x1xf32>
    %23 = math.log %22 : vector<8x1xf32>
    %cst_7 = arith.constant 1.000000e+00 : f32
    %24 = vector.broadcast %cst_7 : f32 to vector<8x1xf32>
    %25 = arith.subf %24, %22 : vector<8x1xf32>
    %26 = arith.mulf %25, %25 : vector<8x1xf32>
    %cst_8 = arith.constant 0.000000e+00 : f32
    %27 = vector.broadcast %cst_8 : f32 to vector<8x1xf32>
    %28 = arith.subf %27, %26 : vector<8x1xf32>
    %29 = arith.mulf %28, %23 : vector<8x1xf32>
    %c0_9 = arith.constant 0 : index
    %c0_10 = arith.constant 0 : index
    %30 = vector.load %arg4[%c0_9, %c0_10] : memref<1x1xf32, #tpu.memory_space<vmem>>, vector<1x1xf32>
    %31 = vector.shape_cast %29 : vector<8x1xf32> to vector<1x8x1xf32>
    %cst_11 = arith.constant dense<0.000000e+00> : vector<1xf32>
    %32 = vector.multi_reduction <add>, %31, %cst_11 [1, 2] : vector<1x8x1xf32> to vector<1xf32>
    %33 = vector.shape_cast %32 : vector<1xf32> to vector<1x1x1xf32>
    %34 = vector.extract %33[0, 0, 0] : f32 from vector<1x1x1xf32>
    %35 = vector.broadcast %34 : f32 to vector<1x1xf32>
    %36 = arith.addf %30, %35 : vector<1x1xf32>
    %c0_12 = arith.constant 0 : index
    %c0_13 = arith.constant 0 : index
    %37 = vector.load %arg4[%c0_12, %c0_13] : memref<1x1xf32, #tpu.memory_space<vmem>>, vector<1x1xf32>
    tpu.vector_store %arg4[%c0_12, %c0_13], %36 {strides = array<i32>} : memref<1x1xf32, #tpu.memory_space<vmem>>, vector<1x1xf32>,
    %c0_i32_14 = arith.constant 0 : i32
    %38 = arith.cmpi eq, %arg0, %c0_i32_14 : i32
    %39 = arith.extui %38 : i1 to i32
    %c0_i32_15 = arith.constant 0 : i32
    %40 = arith.cmpi ne, %39, %c0_i32_15 : i32
    scf.if %40 {
      %c0_16 = arith.constant 0 : index
      %c0_17 = arith.constant 0 : index
      %41 = vector.load %arg4[%c0_16, %c0_17] : memref<1x1xf32, #tpu.memory_space<vmem>>, vector<1x1xf32>
      %cst_18 = arith.constant 1.250000e-01 : f32
      %42 = vector.broadcast %cst_18 : f32 to vector<1x1xf32>
      %43 = arith.mulf %41, %42 : vector<1x1xf32>
      %c0_19 = arith.constant 0 : index
      %c0_20 = arith.constant 0 : index
      %44 = vector.load %arg3[%c0_19, %c0_20] : memref<1x1xf32, #tpu.memory_space<vmem>>, vector<1x1xf32>
      tpu.vector_store %arg3[%c0_19, %c0_20], %43 {strides = array<i32>} : memref<1x1xf32, #tpu.memory_space<vmem>>, vector<1x1xf32>,
    } else {
    }
    return
  }
  func.func @transform_0(%arg0: i32) -> (i32, i32) {
    %c0_i32 = arith.constant 0 : i32
    %c0_i32_0 = arith.constant 0 : i32
    return %arg0, %c0_i32 : i32, i32
  }
  func.func @transform_1(%arg0: i32) -> (i32, i32) {
    %c0_i32 = arith.constant 0 : i32
    %c0_i32_0 = arith.constant 0 : i32
    return %arg0, %c0_i32 : i32, i32
  }
  func.func @transform_2(%arg0: i32) -> (i32, i32) {
    %c0_i32 = arith.constant 0 : i32
    %c0_i32_0 = arith.constant 0 : i32
    %c0_i32_1 = arith.constant 0 : i32
    return %c0_i32, %c0_i32_0 : i32, i32
  }
}

</mosaic_0001>

<bundles_post_ra>
// kernel: tpu_custom_call.1
= control target key start
LH: loop header
LB: loop body
LE: loop exit
PB: predicated region body
PF: predicated region fallthrough
CT: control target
= control target key end

     0   :  { %vm20_vm0 = vcmask 261120   ;;  %s166_s0 = inlined_call_operand.vmem [shape: f32[8,32], index: 0, kind: input, shape index: {}]   ;;  %s167_s1 = inlined_call_operand.vmem [shape: s32[8,1], index: 1, kind: input, shape index: {}]   ;;  %s168_s2 = inlined_call_operand.hbm [shape: f32[1,1], index: 2, kind: output, shape index: {}]  }
   0x1   :  { %v18_v0 = vld [vmem:[%s166_s0] sm:$0xff] }
   0x2   :  { %7 = vsyncpa [#allocation4], 0  ;;  %v21_v1 = vsel %vm20_vm0, %v18_v0, -inf  ;;  %v124_v2 = vmov 0   ;;  %v19_v3 = vld [vmem:[%s167_s1] sm:$0xff]  ;;  %vm16_vm1 = vcmask 0   ;;  %v30_v7 = vlaneseq }
   0x3   :  { %93 = vset.pattern.permute.xlu0 %v124_v2  ;;  %v125_v4 = vmov 0.0   ;;  %vm52_vm3 = vcmask 7168   ;;  %s126_s1 = smov [#allocation3]  }
   0x4   :  { %22 = vmax.xlane.f32.xlu0 %v21_v1  ;;  %17 = vst.msk [vmem:[#allocation2] sm:$0x1] %vm16_vm1, %v125_v4  ;;  %v31_v9 = vand.u32 127, %v30_v7  ;;  %s79_s13 = sshll.u32 %s126_s1, 4  ;;  %s80_s13 = int_to_ptr.vmem [resolvable:$true] %s79_s13 }
   0x5   :  { %s100_s14 = scalar_lea.vmem %s80_s13, 16  ;;  %s104_s15 = scalar_lea.vmem %s80_s13, 32 }
   0x6   :  { %p101_p0 = scmp.ne.s32.totalorder %s80_s13, %s100_s14  ;;  %p105_p1 = scmp.lt.s32.totalorder %s80_s13, %s80_s13 }
   0x7   :  { %p106_p2 = scmp.lt.s32.totalorder %s104_s15, %s100_s14 }
   0x9   :  { %p107_p3 = por %p106_p2, %p105_p1 }
   0xb   :  { %v51_v35 = vld [vmem:[#allocation2] sm:$0x1]  ;;  %p108_p4 = pnand %p107_p3, %p101_p0 }
  0x1a   :  { %33 = vperm.xlu0 %93, %v19_v3  }
  0x91   :  { %v23_v5 = vpop.xlane.xlu0 %22 }
  0x92   :  { %v24_v6 = vsub.f32 %v18_v0, %v23_v5 }
  0x94   :  { %v25_v8 = vmul.f32 1.442695, %v24_v6 }
  0x96   :  { %94 = vpow2.f32 %v25_v8 }
  0x99   :  { %v34_v10 = vpop.permute.xlu0 %33 }
  0x9a   :  { %vm35_vm2 = vcmp.eq.s32.totalorder %v31_v9, %v34_v10 }
  0x9b   :  { %v87_v11 = vsel %vm35_vm2, 1.0, %v125_v4 }
  0xa0   :  { %v95_v12 = vpop.eup %94 }
  0xa1   :  { %v27_v13 = vsel %vm20_vm0, %v95_v12, 0.0  ;;  %v38_v14 = vmul.f32 %v95_v12, %v87_v11 }
  0xa2   :  { %28 = vadd.xlane.f32.xlu1 %v27_v13 }
  0xa3   :  { %v39_v15 = vsel %vm20_vm0, %v38_v14, 0.0 }
  0xa6   :  { %40 = vadd.xlane.f32.xlu1 %v39_v15 }
 0x12f   :  { %v29_v16 = vpop.xlane.xlu1 %28 }
 0x130   :  { %96 = vrcp.f32 %v29_v16 }
 0x133   :  { %v41_v18 = vpop.xlane.xlu1 %40 }
 0x13a   :  { %v97_v17 = vpop.eup %96 }
 0x13b   :  { %v43_v19 = vmul.f32 %v97_v17, %v41_v18 }
 0x13d   :  { %v44_v20 = vmax.f32 %v43_v19, 1e-10 }
 0x13f   :  { %98 = vlog2.f32 %v44_v20  ;;  %v47_v21 = vsub.f32 1.0, %v44_v20 }
 0x141   :  { %v48_v22 = vmul.f32 %v47_v21, %v47_v21 }
 0x143   :  { %v49_v24 = vsub.f32 0.0, %v48_v22 }
 0x149   :  { %v99_v23 = vpop.eup %98 }
 0x14a   :  { %v46_v25 = vmul.f32 0.6931472, %v99_v23 }
 0x14c   :  { %v50_v26 = vmul.f32 %v49_v24, %v46_v25 }
 0x14e   :  { %v53_v27 = vsel %vm52_vm3, %v50_v26, 0.0 }
 0x14f   :  { %54 = vadd.xlane.f32.xlu1 %v53_v27 }
 0x1dc   :  { %v55_v28 = vpop.xlane.xlu1 %54 }
 0x1dd   :  { %v56_v29 = vrot.slane %v55_v28, 4 }
 0x1df   :  { %v57_v30 = vadd.f32 %v56_v29, %v55_v28 }
 0x1e1   :  { %v58_v31 = vrot.slane %v57_v30, 2 }
 0x1e3   :  { %v59_v32 = vadd.f32 %v58_v31, %v57_v30 }
 0x1e5   :  { %v60_v33 = vrot.slane %v59_v32, 1 }
 0x1e7   :  { %v61_v34 = vadd.f32 %v60_v33, %v59_v32 }
 0x1e9   :  { %88 = vpush %v61_v34 }
 0x21a   :  { %s89_s0 = spop %88 }
 0x21b   :  { %v63_v36 = vstv %s89_s0 }
 0x21c   :  { %v64_v37 = vadd.f32 %v63_v36, %v51_v35 }
 0x21e   :  { %66 = vst.msk [vmem:[#allocation2] sm:$0x1] %vm16_vm1, %v64_v37 }
 0x225   :  { %v70_v38 = vld [vmem:[#allocation2] sm:$0x1] }
 0x226   :  { %v71_v39 = vmul.f32 0.125, %v70_v38 }
 0x228   :  { %72 = vst.msk [vmem:[#allocation3] sm:$0x1] %vm16_vm1, %v71_v39 }
 0x229   :  { %111 = shalt.err (!%p108_p4)
}
 0x22a   :  { %s112_s18 = scalar_lea.hbm %s168_s2, 16 }
 0x22b   :  { %p113_p5 = scmp.ne.s32.totalorder %s168_s2, %s112_s18  ;;  %p116_p6 = scmp.lt.u32.totalorder %s112_s18, %s168_s2 }
 0x22d   :  { %p118_p7 = pnand %p116_p6, %p113_p5 }
 0x22f   :  { %121 = shalt.err (!%p118_p7)
}
 0x230   :  { %82 = dma.vmem_to_hbm [thread:$0]  %s80_s13, 16, %s168_s2, [#allocation4]  }
 0x231   :  { %122 = dma.done.wait [#allocation4], 16  }
 0x232   :  { %123 = vsyncadd [#allocation4], 4294967280 }
 0x233   :  { %86 = vsyncpa [#allocation4], 1 }

</bundles_post_ra>
